<compile_context>
chip_gen: v6e
topology: v6e:2x2x1
jax: 0.10.0
libtpu: 0.0.40
codegen_flags: <defaults>
</compile_context>

<pallas_src>
import functools

import jax
import jax.numpy as jnp
from jax.experimental import pallas as pl
from jax.experimental.pallas import tpu as pltpu


# ----------------------------- kernel ---------------------------------------

def _linear_with_edge_kernel(
    x1_ref, x2_ref,                 # [TN, P*d1] f32, [TN, P*d2] f32
    w_ipa1_ref, w_ipa2_ref, b0_ref, # blockdiag ipa weights (bf16), summed bias (f32)
    w1a_ref, b1a_ref,               # lin1 first  Linear (blockdiag / tiled)
    w1b_ref, b1b_ref,               # lin1 second Linear
    w2a_ref, b2a_ref,               # lin2 first  Linear
    w2b_ref, b2b_ref,               # lin2 second Linear
    w3_ref, b3_ref,                 # lin3 Linear
    o_ref,                          # [TN, P*out_features] f32
):
    f32 = jnp.float32
    bf16 = jnp.bfloat16

    def relu(v):
        return jnp.maximum(v, 0.0)

    def dot(v, w_ref):
        # MXU dot: bf16 operands, f32 accumulation.
        return jnp.dot(v.astype(bf16), w_ref[...], preferred_element_type=f32)

    # x = ipa_linear1(x1) + ipa_linear2(x2)
    x = dot(x1_ref[...], w_ipa1_ref) + dot(x2_ref[...], w_ipa2_ref) + b0_ref[...]

    # x = x + lin1(x)   where lin1 = ReLU -> Linear -> ReLU -> Linear
    h = dot(relu(x), w1a_ref) + b1a_ref[...]
    h = dot(relu(h), w1b_ref) + b1b_ref[...]
    x = x + h

    # x = x + lin2(x)
    h = dot(relu(x), w2a_ref) + b2a_ref[...]
    h = dot(relu(h), w2b_ref) + b2b_ref[...]
    x = x + h

    # x = lin3(x)       where lin3 = ReLU -> Linear
    o_ref[...] = (dot(relu(x), w3_ref) + b3_ref[...]).astype(o_ref.dtype)


# ----------------------------- param prep ------------------------------------

def _round_up(n, m):
    return ((n + m - 1) // m) * m


def default_pack_factor():
    """P tokens packed per MXU row.  hidden=32 -> P=4 fills a 128-wide MXU
    (v5e/v4); P=8 fills the 256-wide MXU on v6e/v7x and makes the final
    output exactly 128 lanes wide (fully unmasked stores)."""
    try:
        kind = jax.devices()[0].device_kind.lower()
    except Exception:
        return 8
    if "v5" in kind or "v4" in kind:
        return 4
    return 8


def prepare_params(params, pack=None):
    """One-time conversion of torch-layout params (W:[out,in], b:[out]) to the
    packed kernel layout: W.T block-diagonalised `pack` times (bf16), biases
    tiled `pack` times (f32, [1, pack*out]); the two ipa biases are summed."""
    if pack is None:
        pack = default_pack_factor()
    eye = jnp.eye(pack, dtype=jnp.float32)

    def blockdiag(W):
        return jnp.kron(eye, W.T.astype(jnp.float32)).astype(jnp.bfloat16)

    def tile_bias(b):
        return jnp.tile(b.reshape(1, -1).astype(jnp.float32), (1, pack))

    W1, b1 = params["ipa1"]
    W2, b2 = params["ipa2"]
    flat = [blockdiag(W1), blockdiag(W2), tile_bias(b1 + b2)]
    for name in ("l1a", "l1b", "l2a", "l2b", "lin3"):
        W, b = params[name]
        flat.append(blockdiag(W))
        flat.append(tile_bias(b))
    return pack, tuple(flat)


# ----------------------------- wrapper ---------------------------------------

@functools.partial(jax.jit, static_argnames=("pack", "block_rows"))
def linear_with_edge(x1, x2, prepped, pack, block_rows=1024):
    """x1: [N, in+neib] f32, x2: [N, in] f32; prepped from prepare_params().
    Returns [N, out_features] float32."""
    N, d1 = x1.shape
    d2 = x2.shape[1]
    out_lanes = prepped[-2].shape[1]          # pack * out_features
    out_features = out_lanes // pack

    # Tiny pad to a multiple of the pack factor (only when needed).
    n_pad = _round_up(N, pack)
    if n_pad != N:
        x1 = jnp.pad(x1, ((0, n_pad - N), (0, 0)))
        x2 = jnp.pad(x2, ((0, n_pad - N), (0, 0)))
    np_rows = n_pad // pack

    # Row-major reshapes are layout-preserving (free) -- no extra HBM pass.
    x1p = x1.reshape(np_rows, pack * d1)
    x2p = x2.reshape(np_rows, pack * d2)

    # Row tile: multiple of 16 sublanes; aim for >=2 grid steps so the
    # "parallel" axis shards across both v7x TensorCores.  pl.cdiv grid lets
    # Pallas mask the ragged last block (no padding of the whole array).
    if np_rows <= 16:
        tn = np_rows
    else:
        tn = min(block_rows, max(16, _round_up(pl.cdiv(np_rows, 2), 16)))
    grid = (pl.cdiv(np_rows, tn),)

    def row_tile(lanes):
        return pl.BlockSpec((tn, lanes), lambda i: (i, 0))

    def whole(a):
        return pl.BlockSpec(a.shape, lambda i: (0, 0))

    in_specs = [row_tile(pack * d1), row_tile(pack * d2)]
    in_specs += [whole(a) for a in prepped]

    # VMEM sanity: double-buffered activation/output tiles + all weights stay
    # far under the 32 MiB default scoped limit (and v7x's 64 MiB physical
    # VMEM), so no vmem_limit_bytes override is needed.
    weight_bytes = sum(int(a.size) * a.dtype.itemsize for a in prepped)
    io_tile_bytes = 4 * tn * (pack * d1 + pack * d2 + out_lanes)
    assert 2 * (io_tile_bytes + weight_bytes) < 24 * 1024 * 1024, "tile too large for VMEM"

    weights = [prepped[0], prepped[1]] + [prepped[i] for i in (3, 5, 7, 9, 11)]
    flops = 2 * np_rows * sum(int(w.shape[0]) * int(w.shape[1]) for w in weights)
    bytes_accessed = (
        int(x1p.size) * 4 + int(x2p.size) * 4 + weight_bytes
        + np_rows * out_lanes * 4
    )

    out = pl.pallas_call(
        _linear_with_edge_kernel,
        out_shape=jax.ShapeDtypeStruct((np_rows, out_lanes), jnp.float32),
        grid=grid,
        in_specs=in_specs,
        out_specs=row_tile(out_lanes),
        compiler_params=pltpu.CompilerParams(
            dimension_semantics=("parallel",)),
        cost_estimate=pl.CostEstimate(
            flops=flops, transcendentals=0, bytes_accessed=bytes_accessed),
    )(x1p, x2p, *prepped)

    # Unpack tokens back out of the lane dimension (free reshape) and drop pad.
    return out.reshape(n_pad, out_features)[:N]


# ----------------------------- test helpers ---------------------------------

def _make_linear_params(key, in_dim, out_dim):
    # Deterministic init mimicking torch default: U(-1/sqrt(in), 1/sqrt(in)).
    kw, kb = jax.random.split(key)
    bound = 1.0 / (in_dim ** 0.5)
    W = jax.random.uniform(kw, (out_dim, in_dim), jnp.float32, -bound, bound)
    b = jax.random.uniform(kb, (out_dim,), jnp.float32, -bound, bound)
    return W, b


def _reference_f32(x1, x2, params):
    """Pure-f32 reference matching the PyTorch module semantics."""
    def lin(x, p):
        W, b = p
        return x @ W.T + b

    relu = lambda v: jnp.maximum(v, 0.0)
    x = lin(x1, params["ipa1"]) + lin(x2, params["ipa2"])
    x = x + lin(relu(lin(relu(x), params["l1a"])), params["l1b"])
    x = x + lin(relu(lin(relu(x), params["l2a"])), params["l2b"])
    return lin(relu(x), params["lin3"])


def _reference_bf16(x1, x2, params):
    """Emulates kernel numerics: bf16 dot operands, f32 accumulation, f32
    biases/ReLUs/residual.  Blockdiag packing adds only exact zeros, so this
    matches the packed kernel up to accumulation order."""
    f32 = jnp.float32
    bf = lambda v: v.astype(jnp.bfloat16).astype(f32)
    relu = lambda v: jnp.maximum(v, 0.0)

    def lin(v, p):
        W, b = p
        return bf(v) @ bf(W.T) + b

    W1, b1 = params["ipa1"]
    W2, b2 = params["ipa2"]
    x = bf(x1) @ bf(W1.T) + bf(x2) @ bf(W2.T) + (b1 + b2)
    h = lin(relu(x), params["l1a"]); h = lin(relu(h), params["l1b"]); x = x + h
    h = lin(relu(x), params["l2a"]); h = lin(relu(h), params["l2b"]); x = x + h
    return lin(relu(x), params["lin3"])


if __name__ == "__main__":
    # Small shapes consistent with the module's forward.
    in_features = 16
    neibour_dim = 8
    hidden_features = 32
    out_features = 16

    key = jax.random.PRNGKey(0)
    keys = jax.random.split(key, 11)

    params = {
        "ipa1": _make_linear_params(keys[0], in_features + neibour_dim, hidden_features),
        "ipa2": _make_linear_params(keys[1], in_features, hidden_features),
        "l1a": _make_linear_params(keys[2], hidden_features, hidden_features),
        "l1b": _make_linear_params(keys[3], hidden_features, hidden_features),
        "l2a": _make_linear_params(keys[4], hidden_features, hidden_features),
        "l2b": _make_linear_params(keys[5], hidden_features, hidden_features),
        "lin3": _make_linear_params(keys[6], hidden_features, out_features),
    }
    pack, prepped = prepare_params(params)   # P=4 on v4/v5, P=8 on v6e/v7x

    # --- test 1: tiny N (single grid step) ---
    N = 8
    x1 = jax.random.normal(keys[7], (N, in_features + neibour_dim), jnp.float32)
    x2 = jax.random.normal(keys[8], (N, in_features), jnp.float32)

    out = jax.block_until_ready(linear_with_edge(x1, x2, prepped, pack=pack))
    assert out.shape == (N, out_features)
    ref_k = _reference_bf16(x1, x2, params)
    ref_f = _reference_f32(x1, x2, params)
    assert jnp.allclose(out, ref_k, atol=1e-3, rtol=1e-3), "mismatch vs bf16-emulated reference"
    assert jnp.allclose(out, ref_f, atol=5e-2, rtol=5e-2), "mismatch vs f32 reference"

    # --- test 2: N not a multiple of pack/tile; multi-step grid w/ ragged block ---
    N2 = 300
    x1b = jax.random.normal(keys[9], (N2, in_features + neibour_dim), jnp.float32)
    x2b = jax.random.normal(keys[10], (N2, in_features), jnp.float32)

    out2 = jax.block_until_ready(linear_with_edge(x1b, x2b, prepped, pack=pack))
    assert out2.shape == (N2, out_features)
    ref_k2 = _reference_bf16(x1b, x2b, params)
    ref_f2 = _reference_f32(x1b, x2b, params)
    assert jnp.allclose(out2, ref_k2, atol=1e-3, rtol=1e-3), "mismatch vs bf16-emulated reference (tiled)"
    assert jnp.allclose(out2, ref_f2, atol=5e-2, rtol=5e-2), "mismatch vs f32 reference (tiled)"

    print("KERNEL_OK")
</pallas_src>

<mosaic_0001>
module attributes {stable_mosaic.version = 11 : i64} {
  func.func @_linear_with_edge_kernel(%arg0: i32, %arg1: memref<1x192xf32, #tpu.memory_space<vmem>>, %arg2: memref<1x128xf32, #tpu.memory_space<vmem>>, %arg3: memref<192x256xbf16, #tpu.memory_space<vmem>>, %arg4: memref<128x256xbf16, #tpu.memory_space<vmem>>, %arg5: memref<1x256xf32, #tpu.memory_space<vmem>>, %arg6: memref<256x256xbf16, #tpu.memory_space<vmem>>, %arg7: memref<1x256xf32, #tpu.memory_space<vmem>>, %arg8: memref<256x256xbf16, #tpu.memory_space<vmem>>, %arg9: memref<1x256xf32, #tpu.memory_space<vmem>>, %arg10: memref<256x256xbf16, #tpu.memory_space<vmem>>, %arg11: memref<1x256xf32, #tpu.memory_space<vmem>>, %arg12: memref<256x256xbf16, #tpu.memory_space<vmem>>, %arg13: memref<1x256xf32, #tpu.memory_space<vmem>>, %arg14: memref<256x128xbf16, #tpu.memory_space<vmem>>, %arg15: memref<1x128xf32, #tpu.memory_space<vmem>>, %arg16: memref<1x128xf32, #tpu.memory_space<vmem>>) attributes {dimension_semantics = [#tpu.dimension_semantics<parallel>], iteration_bounds = array<i64: 1>, scalar_prefetch = 0 : i64, scratch_operands = 0 : i64, tpu.core_type = #tpu.core_type<tc>, window_params = [{transform_indices = @transform_0, window_bounds = array<i64: 1, 192>}, {transform_indices = @transform_1, window_bounds = array<i64: 1, 128>}, {pipeline_mode = #tpu.pipeline_mode<synchronous>, transform_indices = @transform_2, window_bounds = array<i64: 192, 256>}, {pipeline_mode = #tpu.pipeline_mode<synchronous>, transform_indices = @transform_3, window_bounds = array<i64: 128, 256>}, {pipeline_mode = #tpu.pipeline_mode<synchronous>, transform_indices = @transform_4, window_bounds = array<i64: 1, 256>}, {pipeline_mode = #tpu.pipeline_mode<synchronous>, transform_indices = @transform_5, window_bounds = array<i64: 256, 256>}, {pipeline_mode = #tpu.pipeline_mode<synchronous>, transform_indices = @transform_6, window_bounds = array<i64: 1, 256>}, {pipeline_mode = #tpu.pipeline_mode<synchronous>, transform_indices = @transform_7, window_bounds = array<i64: 256, 256>}, {pipeline_mode = #tpu.pipeline_mode<synchronous>, transform_indices = @transform_8, window_bounds = array<i64: 1, 256>}, {pipeline_mode = #tpu.pipeline_mode<synchronous>, transform_indices = @transform_9, window_bounds = array<i64: 256, 256>}, {pipeline_mode = #tpu.pipeline_mode<synchronous>, transform_indices = @transform_10, window_bounds = array<i64: 1, 256>}, {pipeline_mode = #tpu.pipeline_mode<synchronous>, transform_indices = @transform_11, window_bounds = array<i64: 256, 256>}, {pipeline_mode = #tpu.pipeline_mode<synchronous>, transform_indices = @transform_12, window_bounds = array<i64: 1, 256>}, {pipeline_mode = #tpu.pipeline_mode<synchronous>, transform_indices = @transform_13, window_bounds = array<i64: 256, 128>}, {pipeline_mode = #tpu.pipeline_mode<synchronous>, transform_indices = @transform_14, window_bounds = array<i64: 1, 128>}, {transform_indices = @transform_15, window_bounds = array<i64: 1, 128>}]} {
    %c0 = arith.constant 0 : index
    %c0_0 = arith.constant 0 : index
    %0 = vector.load %arg1[%c0, %c0_0] : memref<1x192xf32, #tpu.memory_space<vmem>>, vector<1x192xf32>
    %1 = arith.truncf %0 : vector<1x192xf32> to vector<1x192xbf16>
    %c0_1 = arith.constant 0 : index
    %c0_2 = arith.constant 0 : index
    %2 = vector.load %arg3[%c0_1, %c0_2] : memref<192x256xbf16, #tpu.memory_space<vmem>>, vector<192x256xbf16>
    %cst = arith.constant dense<0.000000e+00> : vector<1x256xf32>
    %3 = tpu.matmul %1, %2, %cst {dimension_numbers = #tpu.dot_dimension_numbers<[1], [0], [0], [1], [0, 0, 1, 1], [], []>} : vector<1x192xbf16>, vector<192x256xbf16>, vector<1x256xf32> -> vector<1x256xf32>
    %c0_3 = arith.constant 0 : index
    %c0_4 = arith.constant 0 : index
    %4 = vector.load %arg2[%c0_3, %c0_4] : memref<1x128xf32, #tpu.memory_space<vmem>>, vector<1x128xf32>
    %5 = arith.truncf %4 : vector<1x128xf32> to vector<1x128xbf16>
    %c0_5 = arith.constant 0 : index
    %c0_6 = arith.constant 0 : index
    %6 = vector.load %arg4[%c0_5, %c0_6] : memref<128x256xbf16, #tpu.memory_space<vmem>>, vector<128x256xbf16>
    %cst_7 = arith.constant dense<0.000000e+00> : vector<1x256xf32>
    %7 = tpu.matmul %5, %6, %cst_7 {dimension_numbers = #tpu.dot_dimension_numbers<[1], [0], [0], [1], [0, 0, 1, 1], [], []>} : vector<1x128xbf16>, vector<128x256xbf16>, vector<1x256xf32> -> vector<1x256xf32>
    %8 = arith.addf %3, %7 : vector<1x256xf32>
    %c0_8 = arith.constant 0 : index
    %c0_9 = arith.constant 0 : index
    %9 = vector.load %arg5[%c0_8, %c0_9] : memref<1x256xf32, #tpu.memory_space<vmem>>, vector<1x256xf32>
    %10 = arith.addf %8, %9 : vector<1x256xf32>
    %cst_10 = arith.constant 0.000000e+00 : f32
    %11 = vector.broadcast %cst_10 : f32 to vector<1x256xf32>
    %12 = arith.maximumf %10, %11 : vector<1x256xf32>
    %13 = arith.truncf %12 : vector<1x256xf32> to vector<1x256xbf16>
    %c0_11 = arith.constant 0 : index
    %c0_12 = arith.constant 0 : index
    %14 = vector.load %arg6[%c0_11, %c0_12] : memref<256x256xbf16, #tpu.memory_space<vmem>>, vector<256x256xbf16>
    %cst_13 = arith.constant dense<0.000000e+00> : vector<1x256xf32>
    %15 = tpu.matmul %13, %14, %cst_13 {dimension_numbers = #tpu.dot_dimension_numbers<[1], [0], [0], [1], [0, 0, 1, 1], [], []>} : vector<1x256xbf16>, vector<256x256xbf16>, vector<1x256xf32> -> vector<1x256xf32>
    %c0_14 = arith.constant 0 : index
    %c0_15 = arith.constant 0 : index
    %16 = vector.load %arg7[%c0_14, %c0_15] : memref<1x256xf32, #tpu.memory_space<vmem>>, vector<1x256xf32>
    %17 = arith.addf %15, %16 : vector<1x256xf32>
    %cst_16 = arith.constant 0.000000e+00 : f32
    %18 = vector.broadcast %cst_16 : f32 to vector<1x256xf32>
    %19 = arith.maximumf %17, %18 : vector<1x256xf32>
    %20 = arith.truncf %19 : vector<1x256xf32> to vector<1x256xbf16>
    %c0_17 = arith.constant 0 : index
    %c0_18 = arith.constant 0 : index
    %21 = vector.load %arg8[%c0_17, %c0_18] : memref<256x256xbf16, #tpu.memory_space<vmem>>, vector<256x256xbf16>
    %cst_19 = arith.constant dense<0.000000e+00> : vector<1x256xf32>
    %22 = tpu.matmul %20, %21, %cst_19 {dimension_numbers = #tpu.dot_dimension_numbers<[1], [0], [0], [1], [0, 0, 1, 1], [], []>} : vector<1x256xbf16>, vector<256x256xbf16>, vector<1x256xf32> -> vector<1x256xf32>
    %c0_20 = arith.constant 0 : index
    %c0_21 = arith.constant 0 : index
    %23 = vector.load %arg9[%c0_20, %c0_21] : memref<1x256xf32, #tpu.memory_space<vmem>>, vector<1x256xf32>
    %24 = arith.addf %22, %23 : vector<1x256xf32>
    %25 = arith.addf %10, %24 : vector<1x256xf32>
    %cst_22 = arith.constant 0.000000e+00 : f32
    %26 = vector.broadcast %cst_22 : f32 to vector<1x256xf32>
    %27 = arith.maximumf %25, %26 : vector<1x256xf32>
    %28 = arith.truncf %27 : vector<1x256xf32> to vector<1x256xbf16>
    %c0_23 = arith.constant 0 : index
    %c0_24 = arith.constant 0 : index
    %29 = vector.load %arg10[%c0_23, %c0_24] : memref<256x256xbf16, #tpu.memory_space<vmem>>, vector<256x256xbf16>
    %cst_25 = arith.constant dense<0.000000e+00> : vector<1x256xf32>
    %30 = tpu.matmul %28, %29, %cst_25 {dimension_numbers = #tpu.dot_dimension_numbers<[1], [0], [0], [1], [0, 0, 1, 1], [], []>} : vector<1x256xbf16>, vector<256x256xbf16>, vector<1x256xf32> -> vector<1x256xf32>
    %c0_26 = arith.constant 0 : index
    %c0_27 = arith.constant 0 : index
    %31 = vector.load %arg11[%c0_26, %c0_27] : memref<1x256xf32, #tpu.memory_space<vmem>>, vector<1x256xf32>
    %32 = arith.addf %30, %31 : vector<1x256xf32>
    %cst_28 = arith.constant 0.000000e+00 : f32
    %33 = vector.broadcast %cst_28 : f32 to vector<1x256xf32>
    %34 = arith.maximumf %32, %33 : vector<1x256xf32>
    %35 = arith.truncf %34 : vector<1x256xf32> to vector<1x256xbf16>
    %c0_29 = arith.constant 0 : index
    %c0_30 = arith.constant 0 : index
    %36 = vector.load %arg12[%c0_29, %c0_30] : memref<256x256xbf16, #tpu.memory_space<vmem>>, vector<256x256xbf16>
    %cst_31 = arith.constant dense<0.000000e+00> : vector<1x256xf32>
    %37 = tpu.matmul %35, %36, %cst_31 {dimension_numbers = #tpu.dot_dimension_numbers<[1], [0], [0], [1], [0, 0, 1, 1], [], []>} : vector<1x256xbf16>, vector<256x256xbf16>, vector<1x256xf32> -> vector<1x256xf32>
    %c0_32 = arith.constant 0 : index
    %c0_33 = arith.constant 0 : index
    %38 = vector.load %arg13[%c0_32, %c0_33] : memref<1x256xf32, #tpu.memory_space<vmem>>, vector<1x256xf32>
    %39 = arith.addf %37, %38 : vector<1x256xf32>
    %40 = arith.addf %25, %39 : vector<1x256xf32>
    %cst_34 = arith.constant 0.000000e+00 : f32
    %41 = vector.broadcast %cst_34 : f32 to vector<1x256xf32>
    %42 = arith.maximumf %40, %41 : vector<1x256xf32>
    %43 = arith.truncf %42 : vector<1x256xf32> to vector<1x256xbf16>
    %c0_35 = arith.constant 0 : index
    %c0_36 = arith.constant 0 : index
    %44 = vector.load %arg14[%c0_35, %c0_36] : memref<256x128xbf16, #tpu.memory_space<vmem>>, vector<256x128xbf16>
    %cst_37 = arith.constant dense<0.000000e+00> : vector<1x128xf32>
    %45 = tpu.matmul %43, %44, %cst_37 {dimension_numbers = #tpu.dot_dimension_numbers<[1], [0], [0], [1], [0, 0, 1, 1], [], []>} : vector<1x256xbf16>, vector<256x128xbf16>, vector<1x128xf32> -> vector<1x128xf32>
    %c0_38 = arith.constant 0 : index
    %c0_39 = arith.constant 0 : index
    %46 = vector.load %arg15[%c0_38, %c0_39] : memref<1x128xf32, #tpu.memory_space<vmem>>, vector<1x128xf32>
    %47 = arith.addf %45, %46 : vector<1x128xf32>
    %c0_40 = arith.constant 0 : index
    %c0_41 = arith.constant 0 : index
    %48 = vector.load %arg16[%c0_40, %c0_41] : memref<1x128xf32, #tpu.memory_space<vmem>>, vector<1x128xf32>
    tpu.vector_store %arg16[%c0_40, %c0_41], %47 {strides = array<i32>} : memref<1x128xf32, #tpu.memory_space<vmem>>, vector<1x128xf32>,
    return
  }
  func.func @transform_0(%arg0: i32) -> (i32, i32) {
    %c0_i32 = arith.constant 0 : i32
    %c0_i32_0 = arith.constant 0 : i32
    return %arg0, %c0_i32 : i32, i32
  }
  func.func @transform_1(%arg0: i32) -> (i32, i32) {
    %c0_i32 = arith.constant 0 : i32
    %c0_i32_0 = arith.constant 0 : i32
    return %arg0, %c0_i32 : i32, i32
  }
  func.func @transform_2(%arg0: i32) -> (i32, i32) {
    %c0_i32 = arith.constant 0 : i32
    %c0_i32_0 = arith.constant 0 : i32
    %c0_i32_1 = arith.constant 0 : i32
    return %c0_i32, %c0_i32_0 : i32, i32
  }
  func.func @transform_3(%arg0: i32) -> (i32, i32) {
    %c0_i32 = arith.constant 0 : i32
    %c0_i32_0 = arith.constant 0 : i32
    %c0_i32_1 = arith.constant 0 : i32
    return %c0_i32, %c0_i32_0 : i32, i32
  }
  func.func @transform_4(%arg0: i32) -> (i32, i32) {
    %c0_i32 = arith.constant 0 : i32
    %c0_i32_0 = arith.constant 0 : i32
    %c0_i32_1 = arith.constant 0 : i32
    return %c0_i32, %c0_i32_0 : i32, i32
  }
  func.func @transform_5(%arg0: i32) -> (i32, i32) {
    %c0_i32 = arith.constant 0 : i32
    %c0_i32_0 = arith.constant 0 : i32
    %c0_i32_1 = arith.constant 0 : i32
    return %c0_i32, %c0_i32_0 : i32, i32
  }
  func.func @transform_6(%arg0: i32) -> (i32, i32) {
    %c0_i32 = arith.constant 0 : i32
    %c0_i32_0 = arith.constant 0 : i32
    %c0_i32_1 = arith.constant 0 : i32
    return %c0_i32, %c0_i32_0 : i32, i32
  }
  func.func @transform_7(%arg0: i32) -> (i32, i32) {
    %c0_i32 = arith.constant 0 : i32
    %c0_i32_0 = arith.constant 0 : i32
    %c0_i32_1 = arith.constant 0 : i32
    return %c0_i32, %c0_i32_0 : i32, i32
  }
  func.func @transform_8(%arg0: i32) -> (i32, i32) {
    %c0_i32 = arith.constant 0 : i32
    %c0_i32_0 = arith.constant 0 : i32
    %c0_i32_1 = arith.constant 0 : i32
    return %c0_i32, %c0_i32_0 : i32, i32
  }
  func.func @transform_9(%arg0: i32) -> (i32, i32) {
    %c0_i32 = arith.constant 0 : i32
    %c0_i32_0 = arith.constant 0 : i32
    %c0_i32_1 = arith.constant 0 : i32
    return %c0_i32, %c0_i32_0 : i32, i32
  }
  func.func @transform_10(%arg0: i32) -> (i32, i32) {
    %c0_i32 = arith.constant 0 : i32
    %c0_i32_0 = arith.constant 0 : i32
    %c0_i32_1 = arith.constant 0 : i32
    return %c0_i32, %c0_i32_0 : i32, i32
  }
  func.func @transform_11(%arg0: i32) -> (i32, i32) {
    %c0_i32 = arith.constant 0 : i32
    %c0_i32_0 = arith.constant 0 : i32
    %c0_i32_1 = arith.constant 0 : i32
    return %c0_i32, %c0_i32_0 : i32, i32
  }
  func.func @transform_12(%arg0: i32) -> (i32, i32) {
    %c0_i32 = arith.constant 0 : i32
    %c0_i32_0 = arith.constant 0 : i32
    %c0_i32_1 = arith.constant 0 : i32
    return %c0_i32, %c0_i32_0 : i32, i32
  }
  func.func @transform_13(%arg0: i32) -> (i32, i32) {
    %c0_i32 = arith.constant 0 : i32
    %c0_i32_0 = arith.constant 0 : i32
    %c0_i32_1 = arith.constant 0 : i32
    return %c0_i32, %c0_i32_0 : i32, i32
  }
  func.func @transform_14(%arg0: i32) -> (i32, i32) {
    %c0_i32 = arith.constant 0 : i32
    %c0_i32_0 = arith.constant 0 : i32
    %c0_i32_1 = arith.constant 0 : i32
    return %c0_i32, %c0_i32_0 : i32, i32
  }
  func.func @transform_15(%arg0: i32) -> (i32, i32) {
    %c0_i32 = arith.constant 0 : i32
    %c0_i32_0 = arith.constant 0 : i32
    return %arg0, %c0_i32 : i32, i32
  }
}

</mosaic_0001>

<bundles_post_ra>
// kernel: linear_with_edge.1
= control target key start
LH: loop header
LB: loop body
LE: loop exit
PB: predicated region body
PF: predicated region fallthrough
CT: control target
= control target key end

     0   :  { %20 = vsyncpa [#allocation3], 0  ;;  %s2509_s0 = inlined_call_operand.vmem [shape: f32[1,192], index: 0, kind: input, shape index: {}]   ;;  %s2510_s1 = inlined_call_operand.vmem [shape: f32[1,128], index: 1, kind: input, shape index: {}]   ;;  %s2511_s2 = inlined_call_operand.hbm [shape: bf16[192,256], index: 2, kind: input, shape index: {}]   ;;  %s2512_s3 = inlined_call_operand.hbm [shape: bf16[128,256], index: 3, kind: input, shape index: {}]   ;;  %s2513_s4 = inlined_call_operand.vmem [shape: f32[1,256], index: 4, kind: input, shape index: {}]   ;;  %s2514_s5 = inlined_call_operand.hbm [shape: bf16[256,256], index: 5, kind: input, shape index: {}]   ;;  %s2515_s6 = inlined_call_operand.vmem [shape: f32[1,256], index: 6, kind: input, shape index: {}]   ;;  %s2516_s7 = inlined_call_operand.hbm [shape: bf16[256,256], index: 7, kind: input, shape index: {}]   ;;  %s2517_s8 = inlined_call_operand.vmem [shape: f32[1,256], index: 8, kind: input, shape index: {}]   ;;  %s2518_s9 = inlined_call_operand.hbm [shape: bf16[256,256], index: 9, kind: input, shape index: {}]   ;;  %s2519_s10 = inlined_call_operand.vmem [shape: f32[1,256], index: 10, kind: input, shape index: {}]   ;;  %s2520_s11 = inlined_call_operand.hbm [shape: bf16[256,256], index: 11, kind: input, shape index: {}]   ;;  %s2521_s12 = inlined_call_operand.vmem [shape: f32[1,256], index: 12, kind: input, shape index: {}]   ;;  %s2522_s13 = inlined_call_operand.hbm [shape: bf16[256,128], index: 13, kind: input, shape index: {}]   ;;  %s2523_s14 = inlined_call_operand.vmem [shape: f32[1,128], index: 14, kind: input, shape index: {}]   ;;  %s2524_s15 = inlined_call_operand.vmem [shape: f32[1,128], index: 15, kind: output, shape index: {}]  }
   0x1   :  { %21 = vsyncpa [#allocation5], 0 }
   0x2   :  { %22 = vsyncpa [#allocation8], 0 }
   0x3   :  { %23 = vsyncpa [#allocation11], 0  ;;  %s2319_s18 = smov [#allocation4]   ;;  %s2320_s20 = smov [#allocation7]  }
   0x4   :  { %s45_s19 = sshll.u32 %s2319_s18, 4  ;;  %s73_s21 = sshll.u32 %s2320_s20, 4  ;;  %s46_s19 = int_to_ptr.vmem [resolvable:$true] %s45_s19  ;;  %s74_s21 = int_to_ptr.vmem [resolvable:$true] %s73_s21 }
   0x5   :  { %s2179_s22 = scalar_lea.vmem %s46_s19, 2048  ;;  %p2184_p1 = scmp.lt.s32.totalorder %s46_s19, %s46_s19 }
   0x6   :  { %p2180_p0 = scmp.ne.s32.totalorder %s46_s19, %s2179_s22  ;;  %p2185_p2 = scmp.lt.s32.totalorder %s2179_s22, %s2179_s22 }
   0x8   :  { %p2186_p3 = por %p2185_p2, %p2184_p1 }
   0xa   :  { %p2187_p4 = pnand %p2186_p3, %p2180_p0 }
   0xc   :  { %2190 = shalt.err (!%p2187_p4)
}
   0xd   :  { %s2321_s23 = smov 128   ;;  %s2322_s24 = smov 8  }
   0xe   :  { %51 = dma.hbm_to_vmem [thread:$0]  %s2512_s3, 2048, %s46_s19, [#allocation5], %s2321_s23, %s2321_s23, %s2322_s24  }
   0xf   :  { %s2199_s27 = scalar_lea.vmem %s74_s21, 4096  ;;  %p2204_p6 = scmp.lt.s32.totalorder %s74_s21, %s74_s21 }
  0x10   :  { %p2200_p5 = scmp.ne.s32.totalorder %s74_s21, %s2199_s27  ;;  %p2205_p7 = scmp.lt.s32.totalorder %s2199_s27, %s2199_s27 }
  0x12   :  { %p2206_p8 = por %p2205_p7, %p2204_p6 }
  0x14   :  { %p2207_p9 = pnand %p2206_p8, %p2200_p5 }
  0x16   :  { %2210 = shalt.err (!%p2207_p9)
}
  0x17   :  { %79 = dma.hbm_to_vmem [thread:$0]  %s2516_s7, 4096, %s74_s21, [#allocation8], %s2321_s23, %s2321_s23, %s2322_s24  }
  0x18   :  { %s2323_s30 = smov [#allocation10]   ;;  %s2324_s17 = smov [#allocation2]  }
  0x19   :  { %s101_s16 = sshll.u32 %s2323_s30, 4  ;;  %s33_s18 = sshll.u32 %s2324_s17, 4  ;;  %s102_s16 = int_to_ptr.vmem [resolvable:$true] %s101_s16  ;;  %s34_s18 = int_to_ptr.vmem [resolvable:$true] %s33_s18 }
  0x1a   :  { %s2219_s3 = scalar_lea.vmem %s102_s16, 4096  ;;  %p2224_p11 = scmp.lt.s32.totalorder %s102_s16, %s102_s16 }
  0x1b   :  { %p2220_p10 = scmp.ne.s32.totalorder %s102_s16, %s2219_s3  ;;  %p2225_p12 = scmp.lt.s32.totalorder %s2219_s3, %s2219_s3 }
  0x1d   :  { %p2226_p13 = por %p2225_p12, %p2224_p11 }
  0x1f   :  { %p2227_p0 = pnand %p2226_p13, %p2220_p10 }
  0x21   :  { %2230 = shalt.err (!%p2227_p0)
}
  0x22   :  { %107 = dma.hbm_to_vmem [thread:$0]  %s2520_s11, 4096, %s102_s16, [#allocation11], %s2321_s23, %s2321_s23, %s2322_s24  }
  0x23   :  { %s2239_s7 = scalar_lea.vmem %s34_s18, 3072  ;;  %p2244_p2 = scmp.lt.s32.totalorder %s34_s18, %s34_s18 }
  0x24   :  { %p2240_p1 = scmp.ne.s32.totalorder %s34_s18, %s2239_s7  ;;  %p2245_p3 = scmp.lt.s32.totalorder %s2239_s7, %s2239_s7 }
  0x26   :  { %p2246_p4 = por %p2245_p3, %p2244_p2 }
  0x28   :  { %p2247_p5 = pnand %p2246_p4, %p2240_p1 }
  0x2a   :  { %2250 = shalt.err (!%p2247_p5)
}
  0x2b   :  { %39 = dma.hbm_to_vmem [thread:$0]  %s2511_s2, 3072, %s34_s18, [#allocation3], %s2321_s23, %s2321_s23, %s2322_s24  }
  0x2c   :  { %s2325_s25 = smov [#allocation6]   ;;  %s2326_s27 = smov [#allocation9]  }
  0x2d   :  { %s59_s26 = sshll.u32 %s2325_s25, 4  ;;  %s87_s28 = sshll.u32 %s2326_s27, 4  ;;  %s60_s26 = int_to_ptr.vmem [resolvable:$true] %s59_s26  ;;  %s88_s28 = int_to_ptr.vmem [resolvable:$true] %s87_s28 }
  0x2e   :  { %s2259_s11 = scalar_lea.vmem %s60_s26, 4096  ;;  %p2264_p7 = scmp.lt.s32.totalorder %s60_s26, %s60_s26 }
  0x2f   :  { %p2260_p6 = scmp.ne.s32.totalorder %s60_s26, %s2259_s11  ;;  %p2265_p8 = scmp.lt.s32.totalorder %s2259_s11, %s2259_s11 }
  0x31   :  { %p2266_p9 = por %p2265_p8, %p2264_p7 }
  0x33   :  { %p2267_p10 = pnand %p2266_p9, %p2260_p6 }
  0x35   :  { %2270 = shalt.err (!%p2267_p10)
}
  0x36   :  { %65 = dma.hbm_to_vmem [thread:$0]  %s2514_s5, 4096, %s60_s26, [#allocation5], %s2321_s23, %s2321_s23, %s2322_s24  }
  0x37   :  { %s2279_s2 = scalar_lea.vmem %s88_s28, 4096  ;;  %p2284_p12 = scmp.lt.s32.totalorder %s88_s28, %s88_s28 }
  0x38   :  { %p2280_p11 = scmp.ne.s32.totalorder %s88_s28, %s2279_s2  ;;  %p2285_p13 = scmp.lt.s32.totalorder %s2279_s2, %s2279_s2 }
  0x3a   :  { %p2286_p0 = por %p2285_p13, %p2284_p12 }
  0x3c   :  { %p2287_p1 = pnand %p2286_p0, %p2280_p11 }
  0x3e   :  { %2290 = shalt.err (!%p2287_p1)
}
  0x3f   :  { %93 = dma.hbm_to_vmem [thread:$0]  %s2518_s9, 4096, %s88_s28, [#allocation8], %s2321_s23, %s2321_s23, %s2322_s24  }
  0x40   :  { %s2327_s18 = smov [#allocation12]  }
  0x41   :  { %s115_s3 = sshll.u32 %s2327_s18, 4  ;;  %s116_s3 = int_to_ptr.vmem [resolvable:$true] %s115_s3 }
  0x42   :  { %s2299_s19 = scalar_lea.vmem %s116_s3, 2048  ;;  %p2304_p3 = scmp.lt.s32.totalorder %s116_s3, %s116_s3 }
  0x43   :  { %p2300_p2 = scmp.ne.s32.totalorder %s116_s3, %s2299_s19  ;;  %p2305_p4 = scmp.lt.s32.totalorder %s2299_s19, %s2299_s19 }
  0x45   :  { %p2306_p5 = por %p2305_p4, %p2304_p3 }
  0x47   :  { %p2307_p6 = pnand %p2306_p5, %p2300_p2 }
  0x49   :  { %2310 = shalt.err (!%p2307_p6)
}
  0x4a   :  { %s2328_s5 = smov 64   ;;  %s2329_s20 = smov 4  }
  0x4b   :  { %121 = dma.hbm_to_vmem [thread:$0]  %s2522_s13, 2048, %s116_s3, [#allocation11], %s2328_s5, %s2328_s5, %s2329_s20  }
  0x4c   :  { %2311 = dma.done.wait [#allocation3], 3072  }
  0x4d   :  { %2312 = vsyncadd [#allocation3], 4294964224 }
  0x4e   :  { %2313 = dma.done.wait [#allocation5], 6144  }
  0x4f   :  { %2314 = vsyncadd [#allocation5], 4294961152 }
  0x50   :  { %2315 = dma.done.wait [#allocation8], 8192  }
  0x51   :  { %2316 = vsyncadd [#allocation8], 4294959104 }
  0x52   :  { %2317 = dma.done.wait [#allocation11], 6144  }
  0x53   :  { %2318 = vsyncadd [#allocation11], 4294961152  ;;  %v2330_v0 = vmov 0   ;;  %v1903_v1 = vld [vmem:[#allocation2 + $0x74] ss:$8 sps:$4 sm:$0xff]   ;;  %v148_v21 = vlaneseq  ;;  %vm443_vm0 = vcmask 523264  }
  0x54   :  { %314 = vmatprep.mubr.bf16.mxu0 %v2330_v0  ;;  %v1905_v2 = vld [vmem:[#allocation2 + $0x70] ss:$8 sps:$4 sm:$0xff]   ;;  %447 = vmatprep.subr.bf16.mxu1 %v1903_v1  ;;  %v1906_v3 = vld [vmem:[#allocation2 + $0x64] ss:$8 sps:$4 sm:$0xff]   ;;  %v1908_v4 = vld [vmem:[#allocation2 + $0x60] ss:$8 sps:$4 sm:$0xff]  }
  0x55   :  { %448 = vmatpush1.bf16.msra.mxu1 %v1905_v2  ;;  %v1909_v5 = vld [vmem:[#allocation2 + $0x54] ss:$8 sps:$4 sm:$0xff]   ;;  %v1914_v7 = vld [vmem:[#allocation4 + $0x70] ss:$8 sps:$4 sm:$0xff]   ;;  %v1918_v9 = vld [vmem:[#allocation4 + $0x64] ss:$8 sps:$4 sm:$0xff]  }
  0x56   :  { %449 = vmatprep.subr.bf16.mxu1 %v1906_v3  ;;  %v1912_v6 = vld [vmem:[#allocation4 + $0x74] ss:$8 sps:$4 sm:$0xff]   ;;  %v1911_v8 = vld [vmem:[#allocation2 + $0x50] ss:$8 sps:$4 sm:$0xff]   ;;  %v1920_v10 = vld [vmem:[#allocation4 + $0x60] ss:$8 sps:$4 sm:$0xff]  }
  0x57   :  { %282 = vmatprep.subr.bf16.mxu0 %v1912_v6  ;;  %v1915_v11 = vld [vmem:[#allocation2 + $0x44] ss:$8 sps:$4 sm:$0xff]   ;;  %v1917_v12 = vld [vmem:[#allocation2 + $0x40] ss:$8 sps:$4 sm:$0xff]   ;;  %v1924_v13 = vld [vmem:[#allocation4 + $0x54] ss:$8 sps:$4 sm:$0xff]  }
  0x58   :  { %283 = vmatpush1.bf16.msra.mxu0 %v1914_v7  ;;  %v1921_v14 = vld [vmem:[#allocation2 + $0x34] ss:$8 sps:$4 sm:$0xff]   ;;  %v1926_v15 = vld [vmem:[#allocation4 + $0x50] ss:$8 sps:$4 sm:$0xff]   ;;  %v1930_v16 = vld [vmem:[#allocation4 + $0x44] ss:$8 sps:$4 sm:$0xff]  }
  0x59   :  { %450 = vmatpush1.bf16.msra.mxu1 %v1908_v4  ;;  %284 = vmatprep.subr.bf16.mxu0 %v1918_v9  ;;  %v1923_v17 = vld [vmem:[#allocation2 + $0x30] ss:$8 sps:$4 sm:$0xff]   ;;  %v1927_v18 = vld [vmem:[#allocation2 + $0x24] ss:$8 sps:$4 sm:$0xff]   ;;  %v1932_v19 = vld [vmem:[#allocation4 + $0x40] ss:$8 sps:$4 sm:$0xff]  }
  0x5a   :  { %451 = vmatprep.subr.bf16.mxu1 %v1909_v5  ;;  %v1936_v20 = vld [vmem:[#allocation4 + $0x34] ss:$8 sps:$4 sm:$0xff]   ;;  %v1929_v22 = vld [vmem:[#allocation2 + $0x20] ss:$8 sps:$4 sm:$0xff]   ;;  %v1938_v24 = vld [vmem:[#allocation4 + $0x30] ss:$8 sps:$4 sm:$0xff]  }
  0x5b   :  { %v1933_v23 = vld [vmem:[#allocation2 + $0x14] ss:$8 sps:$4 sm:$0xff]   ;;  %v1942_v25 = vld [vmem:[#allocation4 + $0x24] ss:$8 sps:$4 sm:$0xff]   ;;  %v149_v26 = vshrl.u32 %v148_v21, 7 }
  0x5c   :  { %285 = vmatpush1.bf16.msra.mxu0 %v1920_v10  ;;  %v1935_v27 = vld [vmem:[#allocation2 + $0x10] ss:$8 sps:$4 sm:$0xff]   ;;  %v1939_v28 = vld [vmem:[#allocation2 + $0x4] ss:$8 sps:$4 sm:$0xff]   ;;  %v1944_v29 = vld [vmem:[#allocation4 + $0x20] ss:$8 sps:$4 sm:$0xff]  }
  0x5d   :  { %452 = vmatpush1.bf16.msra.mxu1 %v1911_v8  ;;  %286 = vmatprep.subr.bf16.mxu0 %v1924_v13  ;;  %v1948_v30 = vld [vmem:[#allocation4 + $0x14] ss:$8 sps:$4 sm:$0xff]   ;;  %v2450_v31 = vsub.s32 1, %v149_v26  ;;  %v1941_v32 = vld [vmem:[#allocation2] ss:$8 sps:$4 sm:$0xff]   ;;  %v2459_v50 = vsub.s32 0, %v149_v26 }
  0x5e   :  { %453 = vmatprep.subr.bf16.mxu1 %v1915_v11  ;;  %v1950_v33 = vld [vmem:[#allocation4 + $0x10] ss:$8 sps:$4 sm:$0xff]   ;;  %v146_v34 = vld [vmem:[%s2509_s0] sm:$0x3]  ;;  %v1945_v35 = vld [vmem:[#allocation2 + $0xb4] ss:$8 sps:$4 sm:$0xff]  }
  0x5f   :  { %v1954_v36 = vld [vmem:[#allocation4 + $0x4] ss:$8 sps:$4 sm:$0xff]   ;;  %v155_v37 = vrot.slane %v146_v34, %v2450_v31  ;;  %v1947_v38 = vld [vmem:[#allocation2 + $0xb0] ss:$8 sps:$4 sm:$0xff]   ;;  %v1956_v39 = vld [vmem:[#allocation4] ss:$8 sps:$4 sm:$0xff]   ;;  %v151_v55 = vrot.slane %v146_v34, %v2459_v50 }
  0x60   :  { %287 = vmatpush1.bf16.msra.mxu0 %v1926_v15  ;;  %v184_v41 = vld [vmem:[%s2510_s1] sm:$0x1]  ;;  %v1951_v42 = vld [vmem:[#allocation2 + $0xa4] ss:$8 sps:$4 sm:$0xff]   ;;  %v1965_v43 = vld [vmem:[#allocation6 + $0x74] ss:$8 sps:$4 sm:$0xff]  }
  0x61   :  { %454 = vmatpush1.bf16.msra.mxu1 %v1917_v12  ;;  %288 = vmatprep.subr.bf16.mxu0 %v1930_v16  ;;  %v159_v40 = vpack.c.bf16 %v155_v37, %v155_v37  ;;  %v1953_v44 = vld [vmem:[#allocation2 + $0xa0] ss:$8 sps:$4 sm:$0xff]   ;;  %v185_v45 = vpack.c.bf16 %v184_v41, %v184_v41  ;;  %v1963_v46 = vld [vmem:[#allocation6 + $0x70] ss:$8 sps:$4 sm:$0xff]   ;;  %v1957_v47 = vld [vmem:[#allocation2 + $0x94] ss:$8 sps:$4 sm:$0xff]   ;;  %v158_v59 = vpack.c.bf16 %v151_v55, %v151_v55 }
  0x62   :  { %455 = vmatprep.subr.bf16.mxu1 %v1921_v14  ;;  %v1968_v48 = vld [vmem:[#allocation6 + $0x64] ss:$8 sps:$4 sm:$0xff]   ;;  %v1959_v49 = vld [vmem:[#allocation2 + $0x90] ss:$8 sps:$4 sm:$0xff]   ;;  %v1966_v51 = vld [vmem:[#allocation6 + $0x60] ss:$8 sps:$4 sm:$0xff]  }
  0x63   :  { %1724 = vmatprep.mubr.msk.bf16.mxu1 %vm443_vm0, %v159_v40  ;;  %v1960_v52 = vld [vmem:[#allocation2 + $0x84] ss:$8 sps:$4 sm:$0xff]   ;;  %v1971_v53 = vld [vmem:[#allocation6 + $0x54] ss:$8 sps:$4 sm:$0xff]   ;;  %v1962_v54 = vld [vmem:[#allocation2 + $0x80] ss:$8 sps:$4 sm:$0xff]  }
  0x64   :  { %289 = vmatpush1.bf16.msra.mxu0 %v1932_v19  ;;  %v1969_v56 = vld [vmem:[#allocation6 + $0x50] ss:$8 sps:$4 sm:$0xff]   ;;  %v1974_v57 = vld [vmem:[#allocation6 + $0x44] ss:$8 sps:$4 sm:$0xff]   ;;  %v1972_v58 = vld [vmem:[#allocation6 + $0x40] ss:$8 sps:$4 sm:$0xff]  }
  0x65   :  { %456 = vmatpush1.bf16.msra.mxu1 %v1923_v17  ;;  %290 = vmatprep.subr.bf16.mxu0 %v1936_v20  ;;  %v1977_v60 = vld [vmem:[#allocation6 + $0x34] ss:$8 sps:$4 sm:$0xff]   ;;  %v1975_v61 = vld [vmem:[#allocation6 + $0x30] ss:$8 sps:$4 sm:$0xff]   ;;  %v1980_v62 = vld [vmem:[#allocation6 + $0x24] ss:$8 sps:$4 sm:$0xff]  }
  0x66   :  { %457 = vmatprep.subr.bf16.mxu1 %v1927_v18  ;;  %v1978_v63 = vld [vmem:[#allocation6 + $0x20] ss:$8 sps:$4 sm:$0xff]   ;;  %v1983_v0 = vld [vmem:[#allocation6 + $0x14] ss:$8 sps:$4 sm:$0xff]   ;;  %v1981_v1 = vld [vmem:[#allocation6 + $0x10] ss:$8 sps:$4 sm:$0xff]  }
  0x67   :  { %v1986_v2 = vld [vmem:[#allocation6 + $0x4] ss:$8 sps:$4 sm:$0xff]   ;;  %v1984_v3 = vld [vmem:[#allocation6] ss:$8 sps:$4 sm:$0xff]   ;;  %v1989_v4 = vld [vmem:[#allocation6 + $0xf4] ss:$8 sps:$4 sm:$0xff]  }
  0x68   :  { %291 = vmatpush1.bf16.msra.mxu0 %v1938_v24  ;;  %v1987_v5 = vld [vmem:[#allocation6 + $0xf0] ss:$8 sps:$4 sm:$0xff]   ;;  %v1992_v6 = vld [vmem:[#allocation6 + $0xe4] ss:$8 sps:$4 sm:$0xff]   ;;  %v1990_v7 = vld [vmem:[#allocation6 + $0xe0] ss:$8 sps:$4 sm:$0xff]  }
  0x69   :  { %458 = vmatpush1.bf16.msra.mxu1 %v1929_v22  ;;  %292 = vmatprep.subr.bf16.mxu0 %v1942_v25  ;;  %v1995_v8 = vld [vmem:[#allocation6 + $0xd4] ss:$8 sps:$4 sm:$0xff]   ;;  %v1993_v9 = vld [vmem:[#allocation6 + $0xd0] ss:$8 sps:$4 sm:$0xff]   ;;  %v1998_v10 = vld [vmem:[#allocation6 + $0xc4] ss:$8 sps:$4 sm:$0xff]  }
  0x6a   :  { %459 = vmatprep.subr.bf16.mxu1 %v1933_v23  ;;  %v1996_v11 = vld [vmem:[#allocation6 + $0xc0] ss:$8 sps:$4 sm:$0xff]   ;;  %v1999_v12 = vld [vmem:[#allocation6 + $0xb0] ss:$8 sps:$4 sm:$0xff]   ;;  %v2001_v13 = vld [vmem:[#allocation6 + $0xb4] ss:$8 sps:$4 sm:$0xff]  }
  0x6b   :  { %v2004_v14 = vld [vmem:[#allocation6 + $0xa4] ss:$8 sps:$4 sm:$0xff]   ;;  %v2002_v15 = vld [vmem:[#allocation6 + $0xa0] ss:$8 sps:$4 sm:$0xff]   ;;  %v2007_v16 = vld [vmem:[#allocation6 + $0x94] ss:$8 sps:$4 sm:$0xff]  }
  0x6c   :  { %293 = vmatpush1.bf16.msra.mxu0 %v1944_v29  ;;  %v2005_v17 = vld [vmem:[#allocation6 + $0x90] ss:$8 sps:$4 sm:$0xff]   ;;  %v2010_v18 = vld [vmem:[#allocation6 + $0x84] ss:$8 sps:$4 sm:$0xff]   ;;  %v2008_v19 = vld [vmem:[#allocation6 + $0x80] ss:$8 sps:$4 sm:$0xff]  }
  0x6d   :  { %460 = vmatpush1.bf16.msra.mxu1 %v1935_v27  ;;  %294 = vmatprep.subr.bf16.mxu0 %v1948_v30  ;;  %v2011_v20 = vld [vmem:[#allocation7 + $0x70] ss:$8 sps:$4 sm:$0xff]   ;;  %v2013_v21 = vld [vmem:[#allocation7 + $0x74] ss:$8 sps:$4 sm:$0xff]   ;;  %v2016_v22 = vld [vmem:[#allocation7 + $0x64] ss:$8 sps:$4 sm:$0xff]  }
  0x6e   :  { %461 = vmatprep.subr.bf16.mxu1 %v1939_v28  ;;  %v2014_v23 = vld [vmem:[#allocation7 + $0x60] ss:$8 sps:$4 sm:$0xff]   ;;  %v2019_v24 = vld [vmem:[#allocation7 + $0x54] ss:$8 sps:$4 sm:$0xff]   ;;  %v2017_v25 = vld [vmem:[#allocation7 + $0x50] ss:$8 sps:$4 sm:$0xff]  }
  0x6f   :  { %v2022_v26 = vld [vmem:[#allocation7 + $0x44] ss:$8 sps:$4 sm:$0xff]   ;;  %v2020_v27 = vld [vmem:[#allocation7 + $0x40] ss:$8 sps:$4 sm:$0xff]   ;;  %v2025_v28 = vld [vmem:[#allocation7 + $0x34] ss:$8 sps:$4 sm:$0xff]  }
  0x70   :  { %295 = vmatpush1.bf16.msra.mxu0 %v1950_v33  ;;  %v2023_v29 = vld [vmem:[#allocation7 + $0x30] ss:$8 sps:$4 sm:$0xff]   ;;  %v2028_v30 = vld [vmem:[#allocation7 + $0x24] ss:$8 sps:$4 sm:$0xff]   ;;  %v2031_v33 = vld [vmem:[#allocation7 + $0x14] ss:$8 sps:$4 sm:$0xff]  }
  0x71   :  { %462 = vmatpush1.bf16.msra.mxu1 %v1941_v32  ;;  %296 = vmatprep.subr.bf16.mxu0 %v1954_v36  ;;  %v2026_v32 = vld [vmem:[#allocation7 + $0x20] ss:$8 sps:$4 sm:$0xff]   ;;  %v2029_v34 = vld [vmem:[#allocation7 + $0x10] ss:$8 sps:$4 sm:$0xff]   ;;  %v2037_v37 = vld [vmem:[#allocation7 + $0xf4] ss:$8 sps:$4 sm:$0xff]  }
  0x72   :  { %471 = vmatprep.subr.bf16.mxu1 %v1945_v35  ;;  %v2034_v35 = vld [vmem:[#allocation7 + $0x4] ss:$8 sps:$4 sm:$0xff]   ;;  %v2032_v36 = vld [vmem:[#allocation7] ss:$8 sps:$4 sm:$0xff]   ;;  %v2043_v41 = vld [vmem:[#allocation7 + $0xd4] ss:$8 sps:$4 sm:$0xff]  }
  0x73   :  { %v2038_v40 = vld [vmem:[#allocation7 + $0xe0] ss:$8 sps:$4 sm:$0xff]  }
  0x74   :  { %297 = vmatpush1.bf16.msra.mxu0 %v1956_v39  ;;  %v2040_v39 = vld [vmem:[#allocation7 + $0xe4] ss:$8 sps:$4 sm:$0xff]  }
  0x75   :  { %472 = vmatpush2.bf16.msra.mxu1 %v1947_v38  ;;  %710 = vmatprep.subr.bf16.mxu0 %v1965_v43  ;;  %v2035_v38 = vld [vmem:[#allocation7 + $0xf0] ss:$8 sps:$4 sm:$0xff]   ;;  %v2046_v43 = vld [vmem:[#allocation7 + $0xc4] ss:$8 sps:$4 sm:$0xff]  }
  0x76   :  { %473 = vmatprep.subr.bf16.mxu1 %v1951_v42  ;;  %v2041_v42 = vld [vmem:[#allocation7 + $0xd0] ss:$8 sps:$4 sm:$0xff]  }
  0x77   :  { %315 = vmatmul.mubr.bf16.vlgmr.msra.gmra.mxu0 %v185_v45  ;;  %v2049_v45 = vld [vmem:[#allocation7 + $0xb4] ss:$8 sps:$4 sm:$0xff]  }
  0x78   :  { %711 = vmatpush1.bf16.msra.mxu0 %v1963_v46  ;;  %v2047_v46 = vld [vmem:[#allocation7 + $0xb0] ss:$8 sps:$4 sm:$0xff]  }
  0x79   :  { %474 = vmatpush2.bf16.msra.mxu1 %v1953_v44  ;;  %712 = vmatprep.subr.bf16.mxu0 %v1968_v48  ;;  %v2044_v44 = vld [vmem:[#allocation7 + $0xc0] ss:$8 sps:$4 sm:$0xff]  }
  0x7a   :  { %475 = vmatprep.subr.bf16.mxu1 %v1957_v47  ;;  %v2052_v47 = vld [vmem:[#allocation7 + $0xa4] ss:$8 sps:$4 sm:$0xff]   ;;  %v2050_v48 = vld [vmem:[#allocation7 + $0xa0] ss:$8 sps:$4 sm:$0xff]  }
  0x7c   :  { %713 = vmatpush1.bf16.msra.mxu0 %v1966_v51 }
  0x7d   :  { %476 = vmatpush2.bf16.msra.mxu1 %v1959_v49  ;;  %714 = vmatprep.subr.bf16.mxu0 %v1971_v53 }
  0x7e   :  { %477 = vmatprep.subr.bf16.mxu1 %v1960_v52 }
  0x80   :  { %715 = vmatpush1.bf16.msra.mxu0 %v1969_v56 }
  0x81   :  { %478 = vmatpush2.bf16.msra.mxu1 %v1962_v54  ;;  %716 = vmatprep.subr.bf16.mxu0 %v1974_v57  ;;  %v488_v54 = vld [vmem:[%s2513_s4] sm:$0x3] }
  0x82   :  { %959 = vmatprep.subr.bf16.mxu1 %v2013_v21  ;;  %v493_v55 = vrot.slane %v488_v54, %v2459_v50  ;;  %v2079_v21 = vld [vmem:[#allocation9 + $0x14] ss:$8 sps:$4 sm:$0xff]  }
  0x84   :  { %480 = vmatmul.mubr.bf16.vlgmr.msra.gmra.mxu1 %v158_v59  ;;  %717 = vmatpush1.bf16.msra.mxu0 %v1972_v58  ;;  %v497_v58 = vrot.slane %v488_v54, %v2450_v31  ;;  %v2106_v54 = vld [vmem:[#allocation9 + $0x84] ss:$8 sps:$4 sm:$0xff]  }
  0x85   :  { %718 = vmatprep.subr.bf16.mxu0 %v1977_v60  ;;  %960 = vmatpush1.bf16.msra.mxu1 %v2011_v20  ;;  %v2074_v20 = vld [vmem:[#allocation9 + $0x20] ss:$8 sps:$4 sm:$0xff]  }
  0x86   :  { %961 = vmatprep.subr.bf16.mxu1 %v2016_v22  ;;  %v2077_v22 = vld [vmem:[#allocation9 + $0x10] ss:$8 sps:$4 sm:$0xff]  }
  0x88   :  { %719 = vmatpush1.bf16.msra.mxu0 %v1975_v61 }
  0x89   :  { %720 = vmatprep.subr.bf16.mxu0 %v1980_v62  ;;  %962 = vmatpush1.bf16.msra.mxu1 %v2014_v23  ;;  %v2082_v23 = vld [vmem:[#allocation9 + $0x4] ss:$8 sps:$4 sm:$0xff]  }
  0x8a   :  { %963 = vmatprep.subr.bf16.mxu1 %v2019_v24  ;;  %v2080_v24 = vld [vmem:[#allocation9] ss:$8 sps:$4 sm:$0xff]  }
  0x8c   :  { %721 = vmatpush1.bf16.msra.mxu0 %v1978_v63 }
  0x8d   :  { %722 = vmatprep.subr.bf16.mxu0 %v1983_v0  ;;  %964 = vmatpush1.bf16.msra.mxu1 %v2017_v25  ;;  %v2085_v25 = vld [vmem:[#allocation9 + $0xf4] ss:$8 sps:$4 sm:$0xff]  }
  0x8e   :  { %965 = vmatprep.subr.bf16.mxu1 %v2022_v26  ;;  %v2083_v26 = vld [vmem:[#allocation9 + $0xf0] ss:$8 sps:$4 sm:$0xff]  }
  0x90   :  { %723 = vmatpush1.bf16.msra.mxu0 %v1981_v1 }
  0x91   :  { %724 = vmatprep.subr.bf16.mxu0 %v1986_v2  ;;  %966 = vmatpush1.bf16.msra.mxu1 %v2020_v27  ;;  %v2088_v27 = vld [vmem:[#allocation9 + $0xe4] ss:$8 sps:$4 sm:$0xff]  }
  0x92   :  { %967 = vmatprep.subr.bf16.mxu1 %v2025_v28  ;;  %v2086_v28 = vld [vmem:[#allocation9 + $0xe0] ss:$8 sps:$4 sm:$0xff]  }
  0x94   :  { %725 = vmatpush1.bf16.msra.mxu0 %v1984_v3 }
  0x95   :  { %726 = vmatprep.subr.bf16.mxu0 %v1989_v4  ;;  %968 = vmatpush1.bf16.msra.mxu1 %v2023_v29  ;;  %v2091_v29 = vld [vmem:[#allocation9 + $0xd4] ss:$8 sps:$4 sm:$0xff]  }
  0x96   :  { %969 = vmatprep.subr.bf16.mxu1 %v2028_v30  ;;  %v2089_v30 = vld [vmem:[#allocation9 + $0xd0] ss:$8 sps:$4 sm:$0xff]  }
  0x98   :  { %727 = vmatpush2.bf16.msra.mxu0 %v1987_v5  ;;  %v2055_v5 = vld [vmem:[#allocation7 + $0x94] ss:$8 sps:$4 sm:$0xff]  }
  0x99   :  { %728 = vmatprep.subr.bf16.mxu0 %v1992_v6  ;;  %970 = vmatpush1.bf16.msra.mxu1 %v2026_v32  ;;  %v2053_v6 = vld [vmem:[#allocation7 + $0x90] ss:$8 sps:$4 sm:$0xff]   ;;  %v2094_v32 = vld [vmem:[#allocation9 + $0xc4] ss:$8 sps:$4 sm:$0xff]  }
  0x9a   :  { %971 = vmatprep.subr.bf16.mxu1 %v2031_v33  ;;  %v2092_v33 = vld [vmem:[#allocation9 + $0xc0] ss:$8 sps:$4 sm:$0xff]  }
  0x9c   :  { %729 = vmatpush2.bf16.msra.mxu0 %v1990_v7  ;;  %v2058_v7 = vld [vmem:[#allocation7 + $0x84] ss:$8 sps:$4 sm:$0xff]  }
  0x9d   :  { %730 = vmatprep.subr.bf16.mxu0 %v1995_v8  ;;  %972 = vmatpush1.bf16.msra.mxu1 %v2029_v34  ;;  %v2056_v8 = vld [vmem:[#allocation7 + $0x80] ss:$8 sps:$4 sm:$0xff]   ;;  %v2097_v34 = vld [vmem:[#allocation9 + $0xb4] ss:$8 sps:$4 sm:$0xff]  }
  0x9e   :  { %973 = vmatprep.subr.bf16.mxu1 %v2034_v35  ;;  %v2095_v35 = vld [vmem:[#allocation9 + $0xb0] ss:$8 sps:$4 sm:$0xff]  }
  0xa0   :  { %731 = vmatpush2.bf16.msra.mxu0 %v1993_v9  ;;  %v2059_v9 = vld [vmem:[#allocation9 + $0x70] ss:$8 sps:$4 sm:$0xff]  }
  0xa1   :  { %732 = vmatprep.subr.bf16.mxu0 %v1998_v10  ;;  %974 = vmatpush1.bf16.msra.mxu1 %v2032_v36  ;;  %v2061_v10 = vld [vmem:[#allocation9 + $0x74] ss:$8 sps:$4 sm:$0xff]   ;;  %v538_v36 = vld [vmem:[%s2515_s6] sm:$0x3] }
  0xa2   :  { %975 = vmatprep.subr.bf16.mxu1 %v2037_v37  ;;  %v703_v37 = vrot.slane %v538_v36, %v2459_v50 }
  0xa4   :  { %733 = vmatpush2.bf16.msra.mxu0 %v1996_v11  ;;  %v2064_v11 = vld [vmem:[#allocation9 + $0x64] ss:$8 sps:$4 sm:$0xff]  }
  0xa5   :  { %734 = vmatprep.subr.bf16.mxu0 %v2001_v13  ;;  %976 = vmatpush2.bf16.msra.mxu1 %v2035_v38  ;;  %v2067_v13 = vld [vmem:[#allocation9 + $0x54] ss:$8 sps:$4 sm:$0xff]   ;;  %v707_v38 = vrot.slane %v538_v36, %v2450_v31 }
  0xa6   :  { %977 = vmatprep.subr.bf16.mxu1 %v2040_v39 }
  0xa8   :  { %735 = vmatpush2.bf16.msra.mxu0 %v1999_v12  ;;  %v2062_v12 = vld [vmem:[#allocation9 + $0x60] ss:$8 sps:$4 sm:$0xff]  }
  0xa9   :  { %736 = vmatprep.subr.bf16.mxu0 %v2004_v14  ;;  %978 = vmatpush2.bf16.msra.mxu1 %v2038_v40  ;;  %v2065_v14 = vld [vmem:[#allocation9 + $0x50] ss:$8 sps:$4 sm:$0xff]  }
  0xaa   :  { %979 = vmatprep.subr.bf16.mxu1 %v2043_v41 }
  0xac   :  { %737 = vmatpush2.bf16.msra.mxu0 %v2002_v15  ;;  %v2070_v15 = vld [vmem:[#allocation9 + $0x44] ss:$8 sps:$4 sm:$0xff]  }
  0xad   :  { %738 = vmatprep.subr.bf16.mxu0 %v2007_v16  ;;  %980 = vmatpush2.bf16.msra.mxu1 %v2041_v42  ;;  %v2068_v16 = vld [vmem:[#allocation9 + $0x40] ss:$8 sps:$4 sm:$0xff]  }
  0xae   :  { %981 = vmatprep.subr.bf16.mxu1 %v2046_v43 }
  0xb0   :  { %739 = vmatpush2.bf16.msra.mxu0 %v2005_v17  ;;  %v2073_v17 = vld [vmem:[#allocation9 + $0x34] ss:$8 sps:$4 sm:$0xff]  }
  0xb1   :  { %740 = vmatprep.subr.bf16.mxu0 %v2010_v18  ;;  %982 = vmatpush2.bf16.msra.mxu1 %v2044_v44  ;;  %v2071_v18 = vld [vmem:[#allocation9 + $0x30] ss:$8 sps:$4 sm:$0xff]  }
  0xb2   :  { %983 = vmatprep.subr.bf16.mxu1 %v2049_v45 }
  0xb4   :  { %741 = vmatpush2.bf16.msra.mxu0 %v2008_v19  ;;  %v2076_v19 = vld [vmem:[#allocation9 + $0x24] ss:$8 sps:$4 sm:$0xff]  }
  0xb5   :  { %984 = vmatpush2.bf16.msra.mxu1 %v2047_v46  ;;  %1210 = vmatprep.subr.bf16.mxu0 %v2061_v10  ;;  %v2133_v10 = vld [vmem:[#allocation10 + $0xf4] ss:$8 sps:$4 sm:$0xff]  }
  0xb6   :  { %985 = vmatprep.subr.bf16.mxu1 %v2052_v47 }
  0xb9   :  { %986 = vmatpush2.bf16.msra.mxu1 %v2050_v48 }
  0xba   :  { %987 = vmatprep.subr.bf16.mxu1 %v2055_v5  ;;  %v2122_v5 = vld [vmem:[#allocation10 + $0x20] ss:$8 sps:$4 sm:$0xff]  }
  0xbd   :  { %988 = vmatpush2.bf16.msra.mxu1 %v2053_v6  ;;  %v2127_v6 = vld [vmem:[#allocation10 + $0x14] ss:$8 sps:$4 sm:$0xff]  }
  0xbe   :  { %989 = vmatprep.subr.bf16.mxu1 %v2058_v7  ;;  %v2125_v7 = vld [vmem:[#allocation10 + $0x10] ss:$8 sps:$4 sm:$0xff]  }
  0xc1   :  { %990 = vmatpush2.bf16.msra.mxu1 %v2056_v8  ;;  %v2130_v8 = vld [vmem:[#allocation10 + $0x4] ss:$8 sps:$4 sm:$0xff]  }
 0x137   :  { %v316_v49 = vpop.f32.mrf.mxu0 }
 0x139   :  { %v318_v51 = vpop.f32.mrf.mxu0 }
 0x13b   :  { %v320_v52 = vpop.f32.mrf.mxu0 }
 0x13c   :  { %v2103_v52 = vld [vmem:[#allocation9 + $0x94] ss:$8 sps:$4 sm:$0xff]  }
 0x13d   :  { %v321_v53 = vpop.f32.mrf.mxu0 }
 0x13e   :  { %v2101_v53 = vld [vmem:[#allocation9 + $0x90] ss:$8 sps:$4 sm:$0xff]  }
 0x144   :  { %v481_v56 = vpop.f32.mrf.mxu1 }
 0x145   :  { %v482_v57 = vadd.f32 %v481_v56, %v316_v49  ;;  %v2100_v49 = vld [vmem:[#allocation9 + $0xa4] ss:$8 sps:$4 sm:$0xff]   ;;  %v2107_v56 = vld [vmem:[#allocation10 + $0x70] ss:$8 sps:$4 sm:$0xff]  }
 0x146   :  { %v483_v59 = vpop.f32.mrf.mxu1 }
 0x147   :  { %v2467_v60 = vadd.f32 %v493_v55, %v482_v57  ;;  %v484_v61 = vadd.f32 %v483_v59, %v318_v51  ;;  %v2098_v51 = vld [vmem:[#allocation9 + $0xa0] ss:$8 sps:$4 sm:$0xff]   ;;  %v2109_v57 = vld [vmem:[#allocation10 + $0x74] ss:$8 sps:$4 sm:$0xff]  }
 0x148   :  { %v485_v62 = vpop.f32.mrf.mxu1  ;;  %v2104_v55 = vld [vmem:[#allocation9 + $0x80] ss:$8 sps:$4 sm:$0xff]   ;;  %1459 = vmatprep.subr.bf16.mxu1 %v2109_v57 }
 0x149   :  { %v2469_v63 = vadd.f32 %v497_v58, %v484_v61  ;;  %v502_v0 = vmax.f32 %v2467_v60, 0.0  ;;  %v2112_v58 = vld [vmem:[#allocation10 + $0x64] ss:$8 sps:$4 sm:$0xff]   ;;  %v2110_v59 = vld [vmem:[#allocation10 + $0x60] ss:$8 sps:$4 sm:$0xff]  }
 0x14a   :  { %v486_v1 = vpop.f32.mrf.mxu1  ;;  %v2115_v61 = vld [vmem:[#allocation10 + $0x54] ss:$8 sps:$4 sm:$0xff]   ;;  %v2113_v62 = vld [vmem:[#allocation10 + $0x50] ss:$8 sps:$4 sm:$0xff]  }
 0x14b   :  { %v503_v2 = vmax.f32 %v2469_v63, 0.0  ;;  %v504_v4 = vpack.c.bf16 %v502_v0, %v502_v0  ;;  %v2118_v0 = vld [vmem:[#allocation10 + $0x44] ss:$8 sps:$4 sm:$0xff]   ;;  %v2116_v1 = vld [vmem:[#allocation10 + $0x40] ss:$8 sps:$4 sm:$0xff]  }
 0x14d   :  { %v505_v3 = vpack.c.bf16 %v503_v2, %v503_v2  ;;  %v2121_v2 = vld [vmem:[#allocation10 + $0x34] ss:$8 sps:$4 sm:$0xff]  }
 0x14f   :  { %742 = vmatprep.mubr.bf16.mxu0 %v505_v3  ;;  %v2119_v3 = vld [vmem:[#allocation10 + $0x30] ss:$8 sps:$4 sm:$0xff]  }
 0x150   :  { %743 = vmatmul.mubr.bf16.vlgmr.msra.gmra.mxu0 %v504_v4  ;;  %v2124_v4 = vld [vmem:[#allocation10 + $0x24] ss:$8 sps:$4 sm:$0xff]  }
 0x151   :  { %1211 = vmatpush1.bf16.msra.mxu0 %v2059_v9  ;;  %v2128_v9 = vld [vmem:[#allocation10] ss:$8 sps:$4 sm:$0xff]  }
 0x152   :  { %1212 = vmatprep.subr.bf16.mxu0 %v2064_v11  ;;  %v2131_v11 = vld [vmem:[#allocation10 + $0xf0] ss:$8 sps:$4 sm:$0xff]  }
 0x155   :  { %1213 = vmatpush1.bf16.msra.mxu0 %v2062_v12  ;;  %v2136_v12 = vld [vmem:[#allocation10 + $0xe4] ss:$8 sps:$4 sm:$0xff]  }
 0x156   :  { %1214 = vmatprep.subr.bf16.mxu0 %v2067_v13  ;;  %v2134_v13 = vld [vmem:[#allocation10 + $0xe0] ss:$8 sps:$4 sm:$0xff]  }
 0x159   :  { %1215 = vmatpush1.bf16.msra.mxu0 %v2065_v14  ;;  %v2139_v14 = vld [vmem:[#allocation10 + $0xd4] ss:$8 sps:$4 sm:$0xff]  }
 0x15a   :  { %1216 = vmatprep.subr.bf16.mxu0 %v2070_v15  ;;  %v2137_v15 = vld [vmem:[#allocation10 + $0xd0] ss:$8 sps:$4 sm:$0xff]  }
 0x15d   :  { %1217 = vmatpush1.bf16.msra.mxu0 %v2068_v16  ;;  %v2142_v16 = vld [vmem:[#allocation10 + $0xc4] ss:$8 sps:$4 sm:$0xff]  }
 0x15e   :  { %1218 = vmatprep.subr.bf16.mxu0 %v2073_v17  ;;  %v2140_v17 = vld [vmem:[#allocation10 + $0xc0] ss:$8 sps:$4 sm:$0xff]  }
 0x161   :  { %1219 = vmatpush1.bf16.msra.mxu0 %v2071_v18  ;;  %v2145_v18 = vld [vmem:[#allocation10 + $0xb4] ss:$8 sps:$4 sm:$0xff]  }
 0x162   :  { %1220 = vmatprep.subr.bf16.mxu0 %v2076_v19  ;;  %v2143_v19 = vld [vmem:[#allocation10 + $0xb0] ss:$8 sps:$4 sm:$0xff]  }
 0x165   :  { %1221 = vmatpush1.bf16.msra.mxu0 %v2074_v20  ;;  %v2148_v20 = vld [vmem:[#allocation10 + $0xa4] ss:$8 sps:$4 sm:$0xff]  }
 0x166   :  { %1222 = vmatprep.subr.bf16.mxu0 %v2079_v21  ;;  %v2146_v21 = vld [vmem:[#allocation10 + $0xa0] ss:$8 sps:$4 sm:$0xff]  }
 0x169   :  { %1223 = vmatpush1.bf16.msra.mxu0 %v2077_v22  ;;  %v787_v22 = vld [vmem:[%s2517_s8] sm:$0x3] }
 0x16a   :  { %1224 = vmatprep.subr.bf16.mxu0 %v2082_v23  ;;  %v952_v23 = vrot.slane %v787_v22, %v2459_v50 }
 0x16d   :  { %1225 = vmatpush1.bf16.msra.mxu0 %v2080_v24  ;;  %v956_v24 = vrot.slane %v787_v22, %v2450_v31 }
 0x16e   :  { %1226 = vmatprep.subr.bf16.mxu0 %v2085_v25 }
 0x171   :  { %1227 = vmatpush2.bf16.msra.mxu0 %v2083_v26 }
 0x172   :  { %1228 = vmatprep.subr.bf16.mxu0 %v2088_v27 }
 0x175   :  { %1229 = vmatpush2.bf16.msra.mxu0 %v2086_v28 }
 0x176   :  { %1230 = vmatprep.subr.bf16.mxu0 %v2091_v29 }
 0x179   :  { %1231 = vmatpush2.bf16.msra.mxu0 %v2089_v30 }
 0x17a   :  { %1232 = vmatprep.subr.bf16.mxu0 %v2094_v32 }
 0x17d   :  { %1233 = vmatpush2.bf16.msra.mxu0 %v2092_v33 }
 0x17e   :  { %1234 = vmatprep.subr.bf16.mxu0 %v2097_v34 }
 0x181   :  { %1235 = vmatpush2.bf16.msra.mxu0 %v2095_v35 }
 0x182   :  { %1236 = vmatprep.subr.bf16.mxu0 %v2100_v49  ;;  %v2164_v49 = vld [vmem:[#allocation12 + $0x18] sm:$0xff]  }
 0x185   :  { %1237 = vmatpush2.bf16.msra.mxu0 %v2098_v51  ;;  %v1038_v51 = vld [vmem:[%s2519_s10] sm:$0x3] }
 0x186   :  { %1238 = vmatprep.subr.bf16.mxu0 %v2103_v52  ;;  %v1203_v52 = vrot.slane %v1038_v51, %v2459_v50 }
 0x189   :  { %1239 = vmatpush2.bf16.msra.mxu0 %v2101_v53  ;;  %v1207_v53 = vrot.slane %v1038_v51, %v2450_v31 }
 0x18a   :  { %1240 = vmatprep.subr.bf16.mxu0 %v2106_v54 }
 0x18d   :  { %1241 = vmatpush2.bf16.msra.mxu0 %v2104_v55 }
 0x210   :  { %v744_v39 = vpop.f32.mrf.mxu0 }
 0x211   :  { %v745_v40 = vadd.f32 %v744_v39, %v703_v37  ;;  %v2149_v39 = vld [vmem:[#allocation10 + $0x90] ss:$8 sps:$4 sm:$0xff]  }
 0x212   :  { %v746_v41 = vpop.f32.mrf.mxu0 }
 0x213   :  { %v747_v42 = vadd.f32 %v746_v41, %v707_v38  ;;  %v751_v43 = vmax.f32 %v745_v40, 0.0  ;;  %v2151_v38 = vld [vmem:[#allocation10 + $0x94] ss:$8 sps:$4 sm:$0xff]   ;;  %v2152_v40 = vld [vmem:[#allocation10 + $0x80] ss:$8 sps:$4 sm:$0xff]  }
 0x214   :  { %v748_v44 = vpop.f32.mrf.mxu0  ;;  %v2155_v41 = vld [vmem:[#allocation12 + $0x78] sm:$0xff]  }
 0x215   :  { %v752_v45 = vmax.f32 %v747_v42, 0.0  ;;  %v753_v48 = vpack.c.bf16 %v751_v43, %v751_v43  ;;  %v2157_v42 = vld [vmem:[#allocation12 + $0x70] sm:$0xff]   ;;  %1869 = vmatprep.subr.bf16.mxu0 %v2155_v41  ;;  %v2159_v44 = vld [vmem:[#allocation12 + $0x68] sm:$0xff]  }
 0x216   :  { %v749_v46 = vpop.f32.mrf.mxu0  ;;  %v2158_v43 = vld [vmem:[#allocation12 + $0x30] sm:$0xff]  }
 0x217   :  { %v754_v47 = vpack.c.bf16 %v752_v45, %v752_v45  ;;  %v2160_v45 = vld [vmem:[#allocation12 + $0x28] sm:$0xff]   ;;  %v2161_v46 = vld [vmem:[#allocation12 + $0x60] sm:$0xff]  }
 0x219   :  { %991 = vmatprep.mubr.bf16.mxu1 %v754_v47  ;;  %v2162_v47 = vld [vmem:[#allocation12 + $0x20] sm:$0xff]  }
 0x21a   :  { %992 = vmatmul.mubr.bf16.vlgmr.msra.gmra.mxu1 %v753_v48  ;;  %v2163_v48 = vld [vmem:[#allocation12 + $0x58] sm:$0xff]  }
 0x21b   :  { %1460 = vmatpush1.bf16.msra.mxu1 %v2107_v56 }
 0x21c   :  { %1461 = vmatprep.subr.bf16.mxu1 %v2112_v58 }
 0x21f   :  { %1462 = vmatpush1.bf16.msra.mxu1 %v2110_v59 }
 0x220   :  { %1463 = vmatprep.subr.bf16.mxu1 %v2115_v61 }
 0x223   :  { %1464 = vmatpush1.bf16.msra.mxu1 %v2113_v62 }
 0x224   :  { %1465 = vmatprep.subr.bf16.mxu1 %v2118_v0 }
 0x227   :  { %1466 = vmatpush1.bf16.msra.mxu1 %v2116_v1 }
 0x228   :  { %1467 = vmatprep.subr.bf16.mxu1 %v2121_v2  ;;  %v2165_v2 = vld [vmem:[#allocation12 + $0x50] sm:$0xff]  }
 0x22b   :  { %1468 = vmatpush1.bf16.msra.mxu1 %v2119_v3  ;;  %v2166_v3 = vld [vmem:[#allocation12 + $0x10] sm:$0xff]  }
 0x22c   :  { %1469 = vmatprep.subr.bf16.mxu1 %v2124_v4  ;;  %v2167_v4 = vld [vmem:[#allocation12 + $0x48] sm:$0xff]  }
 0x22f   :  { %1470 = vmatpush1.bf16.msra.mxu1 %v2122_v5  ;;  %v2168_v5 = vld [vmem:[#allocation12 + $0x8] sm:$0xff]  }
 0x230   :  { %1471 = vmatprep.subr.bf16.mxu1 %v2127_v6  ;;  %v2169_v6 = vld [vmem:[#allocation12 + $0x40] sm:$0xff]  }
 0x233   :  { %1472 = vmatpush1.bf16.msra.mxu1 %v2125_v7  ;;  %v2170_v7 = vld [vmem:[#allocation12] sm:$0xff]  }
 0x234   :  { %1473 = vmatprep.subr.bf16.mxu1 %v2130_v8  ;;  %v1287_v8 = vld [vmem:[%s2521_s12] sm:$0x3] }
 0x237   :  { %1474 = vmatpush1.bf16.msra.mxu1 %v2128_v9  ;;  %v1452_v9 = vrot.slane %v1287_v8, %v2459_v50 }
 0x238   :  { %1475 = vmatprep.subr.bf16.mxu1 %v2133_v10  ;;  %v1456_v10 = vrot.slane %v1287_v8, %v2450_v31  ;;  %v1538_v31 = vld [vmem:[%s2523_s14] sm:$0x1] }
 0x23b   :  { %1476 = vmatpush2.bf16.msra.mxu1 %v2131_v11 }
 0x23c   :  { %1477 = vmatprep.subr.bf16.mxu1 %v2136_v12 }
 0x23f   :  { %1478 = vmatpush2.bf16.msra.mxu1 %v2134_v13 }
 0x240   :  { %1479 = vmatprep.subr.bf16.mxu1 %v2139_v14 }
 0x243   :  { %1480 = vmatpush2.bf16.msra.mxu1 %v2137_v15 }
 0x244   :  { %1481 = vmatprep.subr.bf16.mxu1 %v2142_v16 }
 0x247   :  { %1482 = vmatpush2.bf16.msra.mxu1 %v2140_v17 }
 0x248   :  { %1483 = vmatprep.subr.bf16.mxu1 %v2145_v18 }
 0x24b   :  { %1484 = vmatpush2.bf16.msra.mxu1 %v2143_v19 }
 0x24c   :  { %1485 = vmatprep.subr.bf16.mxu1 %v2148_v20 }
 0x24f   :  { %1486 = vmatpush2.bf16.msra.mxu1 %v2146_v21 }
 0x250   :  { %1487 = vmatprep.subr.bf16.mxu1 %v2151_v38 }
 0x253   :  { %1488 = vmatpush2.bf16.msra.mxu1 %v2149_v39 }
 0x2da   :  { %v993_v25 = vpop.f32.mrf.mxu1 }
 0x2db   :  { %v994_v26 = vadd.f32 %v993_v25, %v952_v23 }
 0x2dc   :  { %v995_v27 = vpop.f32.mrf.mxu1 }
 0x2dd   :  { %v2484_v28 = vadd.f32 %v994_v26, %v2467_v60  ;;  %v996_v29 = vadd.f32 %v995_v27, %v956_v24  ;;  %v2154_v60 = vld [vmem:[#allocation10 + $0x84] ss:$8 sps:$4 sm:$0xff]  }
 0x2de   :  { %v997_v30 = vpop.f32.mrf.mxu1  ;;  %1489 = vmatprep.subr.bf16.mxu1 %v2154_v60 }
 0x2df   :  { %v2487_v32 = vadd.f32 %v996_v29, %v2469_v63  ;;  %v1002_v33 = vmax.f32 %v2484_v28, 0.0  ;;  %1490 = vmatpush2.bf16.msra.mxu1 %v2152_v40  ;;  %v2156_v63 = vld [vmem:[#allocation12 + $0x38] sm:$0xff]  }
 0x2e0   :  { %v998_v34 = vpop.f32.mrf.mxu1 }
 0x2e1   :  { %v1003_v35 = vmax.f32 %v2487_v32, 0.0  ;;  %v1004_v37 = vpack.c.bf16 %v1002_v33, %v1002_v33 }
 0x2e3   :  { %v1005_v36 = vpack.c.bf16 %v1003_v35, %v1003_v35 }
 0x2e5   :  { %1242 = vmatprep.mubr.bf16.mxu0 %v1005_v36 }
 0x2e6   :  { %1243 = vmatmul.mubr.bf16.vlgmr.msra.gmra.mxu0 %v1004_v37 }
 0x2e7   :  { %1870 = vmatpush3.bf16.msra.mxu0 %v2156_v63 }
 0x2e8   :  { %1871 = vmatprep.subr.bf16.mxu0 %v2157_v42 }
 0x2eb   :  { %1872 = vmatpush3.bf16.msra.mxu0 %v2158_v43 }
 0x2ec   :  { %1873 = vmatprep.subr.bf16.mxu0 %v2159_v44 }
 0x2ef   :  { %1874 = vmatpush3.bf16.msra.mxu0 %v2160_v45 }
 0x2f0   :  { %1875 = vmatprep.subr.bf16.mxu0 %v2161_v46 }
 0x2f3   :  { %1876 = vmatpush3.bf16.msra.mxu0 %v2162_v47 }
 0x2f4   :  { %1877 = vmatprep.subr.bf16.mxu0 %v2163_v48 }
 0x2f7   :  { %1878 = vmatpush3.bf16.msra.mxu0 %v2164_v49 }
 0x2f8   :  { %1879 = vmatprep.subr.bf16.mxu0 %v2165_v2 }
 0x2fb   :  { %1880 = vmatpush3.bf16.msra.mxu0 %v2166_v3 }
 0x2fc   :  { %1881 = vmatprep.subr.bf16.mxu0 %v2167_v4 }
 0x2ff   :  { %1882 = vmatpush3.bf16.msra.mxu0 %v2168_v5 }
 0x300   :  { %1883 = vmatprep.subr.bf16.mxu0 %v2169_v6 }
 0x303   :  { %1884 = vmatpush3.bf16.msra.mxu0 %v2170_v7 }
 0x3a6   :  { %v1244_v54 = vpop.f32.mrf.mxu0 }
 0x3a7   :  { %v1245_v55 = vadd.f32 %v1244_v54, %v1203_v52 }
 0x3a8   :  { %v1246_v56 = vpop.f32.mrf.mxu0 }
 0x3a9   :  { %v1247_v57 = vadd.f32 %v1246_v56, %v1207_v53  ;;  %v1251_v58 = vmax.f32 %v1245_v55, 0.0 }
 0x3aa   :  { %v1248_v59 = vpop.f32.mrf.mxu0 }
 0x3ab   :  { %v1252_v61 = vmax.f32 %v1247_v57, 0.0  ;;  %v1253_v1 = vpack.c.bf16 %v1251_v58, %v1251_v58 }
 0x3ac   :  { %v1249_v62 = vpop.f32.mrf.mxu0 }
 0x3ad   :  { %v1254_v0 = vpack.c.bf16 %v1252_v61, %v1252_v61 }
 0x3af   :  { %1491 = vmatprep.mubr.bf16.mxu1 %v1254_v0 }
 0x3b0   :  { %1492 = vmatmul.mubr.bf16.vlgmr.msra.gmra.mxu1 %v1253_v1 }
 0x470   :  { %v1493_v11 = vpop.f32.mrf.mxu1 }
 0x471   :  { %v1494_v12 = vadd.f32 %v1493_v11, %v1452_v9 }
 0x472   :  { %v1495_v13 = vpop.f32.mrf.mxu1 }
 0x473   :  { %v1500_v14 = vadd.f32 %v1494_v12, %v2484_v28  ;;  %v1496_v15 = vadd.f32 %v1495_v13, %v1456_v10 }
 0x474   :  { %v1497_v16 = vpop.f32.mrf.mxu1 }
 0x475   :  { %v1501_v17 = vadd.f32 %v1496_v15, %v2487_v32  ;;  %v1502_v18 = vmax.f32 %v1500_v14, 0.0 }
 0x476   :  { %v1498_v19 = vpop.f32.mrf.mxu1 }
 0x477   :  { %v1503_v20 = vmax.f32 %v1501_v17, 0.0  ;;  %v1504_v22 = vpack.c.bf16 %v1502_v18, %v1502_v18 }
 0x479   :  { %v1505_v21 = vpack.c.bf16 %v1503_v20, %v1503_v20 }
 0x47b   :  { %1667 = vmatprep.mubr.bf16.mxu0 %v1505_v21 }
 0x47c   :  { %1668 = vmatmul.mubr.bf16.vlgmr.msra.gmra.mxu0 %v1504_v22 }
 0x53c   :  { %v1885_v23 = vpop.f32.mrf.mxu0 }
 0x53e   :  { %v1886_v50 = vpop.f32.mrf.mxu0 }
 0x53f   :  { %v1887_v24 = vadd.f32 %v1886_v50, %v1885_v23 }
 0x540   :  { %v1888_v25 = vpop.f32.mrf.mxu0 }
 0x541   :  { %v1670_v26 = vadd.f32 %v1887_v24, %v1538_v31 }
 0x542   :  { %v1889_v27 = vpop.f32.mrf.mxu0 }
 0x543   :  { %1675 = vst [vmem:[%s2524_s15] sm:$0x1] %v1670_v26 }
 0x544   :  { %1680 = vsyncpa [#allocation3], 1 }
 0x545   :  { %1681 = vsyncpa [#allocation5], 1 }
 0x546   :  { %1682 = vsyncpa [#allocation8], 1 }
 0x547   :  { %1683 = vsyncpa [#allocation11], 1 }

</bundles_post_ra>
